<compile_context>
chip_gen: v7x
topology: tpu7x:2x2x1
jax: 0.10.0
libtpu: 0.0.40
codegen_flags: <defaults>
</compile_context>

<pallas_src>
import jax
import jax.numpy as jnp
from jax.experimental import pallas as pl
from jax.experimental.pallas import tpu as pltpu

HIDDEN_SIZE = 32
STRING_LENGTH = 5
NUM_CLASSES = STRING_LENGTH + 1     # 6
VOCAB_SIZE = 26

_LANES = 128
_SUBLANES = 8
_PRECISION = jax.lax.Precision.HIGHEST


def _round_up(n, m):
    return ((n + m - 1) // m) * m


def rnn_fc_kernel(x_ref, p_rnn_ref, p_fc_ref, out_ref):
    """One batch tile: T-step tanh RNN + final Linear.

    x_ref:     (TB, T, V)       f32, batch-major (module layout, unpadded)
    p_rnn_ref: (Vp + H + 8, H)  f32 pack: rows [0,V)=W_ih^T (rows [V,Vp) zero),
                                rows [Vp,Vp+H)=W_hh^T, row Vp+H = b_ih + b_hh
    p_fc_ref:  (H + 8, Cp)      f32 pack: rows [0,H)=W_fc^T (lane-padded),
                                row H = b_fc (lane-padded)
    out_ref:   (TB, Cp)         f32, lane-dense logits (real classes in [:, :C])
    """
    TB, T, V = x_ref.shape
    H = HIDDEN_SIZE
    Vp = _round_up(V, _SUBLANES)

    w_ih = p_rnn_ref[0:V, :]                        # (V, H), 8-aligned start
    w_hh = p_rnn_ref[Vp:Vp + H, :]                  # (H, H)
    b = p_rnn_ref[Vp + H:Vp + H + 1, :]             # (1, H) fused bias

    x = x_ref[...]                                  # single VMEM load of the tile

    # Input projections for every timestep. Independent of h -> off the serial
    # recurrence chain; the LLO scheduler overlaps them with the h @ W_hh dots.
    xp = [
        jnp.dot(x[:, t, :], w_ih,
                preferred_element_type=jnp.float32, precision=_PRECISION) + b
        for t in range(T)
    ]

    # Serial recurrence. h_0 == 0, so step 0 needs no W_hh matmul at all.
    h = jnp.tanh(xp[0])
    for t in range(1, T):                           # T tiny & static -> unroll
        h = jnp.tanh(xp[t] + jnp.dot(h, w_hh,
                                     preferred_element_type=jnp.float32,
                                     precision=_PRECISION))

    w_fc = p_fc_ref[0:H, :]                         # (H, Cp)
    b_fc = p_fc_ref[H:H + 1, :]                     # (1, Cp)
    out_ref[...] = jnp.dot(h, w_fc, preferred_element_type=jnp.float32,
                           precision=_PRECISION) + b_fc


def pack_position_predictor_params(w_ih, w_hh, b_ih, b_hh, w_fc, b_fc):
    """One-time packing of module parameters into two VMEM-friendly operands.

    Call at model init (not per forward). Segments are 8-row aligned so the
    kernel slices them at aligned offsets.
    """
    H, V = w_ih.shape
    C = w_fc.shape[0]
    Vp = _round_up(V, _SUBLANES)
    Cp = _LANES
    f32 = jnp.float32

    w_ih_t = jnp.pad(w_ih.astype(f32).T, ((0, Vp - V), (0, 0)))          # (Vp, H)
    w_hh_t = w_hh.astype(f32).T                                          # (H, H)
    b_rnn = jnp.pad((b_ih + b_hh).astype(f32)[None, :],
                    ((0, _SUBLANES - 1), (0, 0)))                        # (8, H)
    p_rnn = jnp.concatenate([w_ih_t, w_hh_t, b_rnn], axis=0)             # (Vp+H+8, H)

    w_fc_t = jnp.pad(w_fc.astype(f32).T, ((0, 0), (0, Cp - C)))          # (H, Cp)
    b_fc_p = jnp.pad(b_fc.astype(f32)[None, :],
                     ((0, _SUBLANES - 1), (0, Cp - C)))                  # (8, Cp)
    p_fc = jnp.concatenate([w_fc_t, b_fc_p], axis=0)                     # (H+8, Cp)
    return p_rnn, p_fc


def _choose_batch_tile(B, max_block_b):
    b8 = _round_up(B, _SUBLANES)
    if B >= 16:
        # At least 2 grid steps so the "parallel" axis can shard across v7x's
        # two TensorCores (two equal tiles rather than one giant one).
        tb = _round_up(-(-b8 // 2), _SUBLANES)
    else:
        tb = b8
    return min(tb, max_block_b)


def position_predictor_forward(x, p_rnn, p_fc, *, num_classes=NUM_CLASSES,
                               max_block_b=512):
    """out = fc(rnn(x)[:, -1, :]) with pre-packed parameters.

    x: (B, T, V) f32 batch-major, exactly as the PyTorch module receives it.
    p_rnn, p_fc: outputs of pack_position_predictor_params (built once at init).
    """
    B, T, V = x.shape
    H = HIDDEN_SIZE
    Vp = _round_up(V, _SUBLANES)
    Cp = _LANES
    assert p_rnn.shape == (Vp + H + _SUBLANES, H)
    assert p_fc.shape == (H + _SUBLANES, Cp)

    TB = _choose_batch_tile(B, max_block_b)
    B_pad = _round_up(B, TB)
    if B_pad != B:
        x = jnp.pad(x, ((0, B_pad - B), (0, 0), (0, 0)))

    out = pl.pallas_call(
        rnn_fc_kernel,
        out_shape=jax.ShapeDtypeStruct((B_pad, Cp), jnp.float32),
        grid=(B_pad // TB,),
        in_specs=[
            pl.BlockSpec((TB, T, V), lambda i: (i, 0, 0)),
            pl.BlockSpec(p_rnn.shape, lambda i: (0, 0)),
            pl.BlockSpec(p_fc.shape, lambda i: (0, 0)),
        ],
        out_specs=pl.BlockSpec((TB, Cp), lambda i: (i, 0)),
        compiler_params=pltpu.CompilerParams(
            dimension_semantics=("parallel",)),
    )(x, p_rnn, p_fc)

    return out[:B, :num_classes]


def _reference_forward(x, w_ih, w_hh, b_ih, b_hh, w_fc, b_fc):
    """Pure-JAX reference for torch.nn.RNN(batch_first=True, tanh) + Linear."""
    B, T, _ = x.shape
    dot = lambda a, b: jnp.dot(a, b, precision=_PRECISION)
    h = jnp.zeros((B, HIDDEN_SIZE), jnp.float32)
    for t in range(T):
        h = jnp.tanh(dot(x[:, t, :], w_ih.T) + b_ih + dot(h, w_hh.T) + b_hh)
    return dot(h, w_fc.T) + b_fc


if __name__ == "__main__":
    key = jax.random.PRNGKey(0)
    k_x, k1, k2, k3, k4, k5, k6 = jax.random.split(key, 7)

    B, T = 8, STRING_LENGTH
    x = jax.random.normal(k_x, (B, T, VOCAB_SIZE), dtype=jnp.float32)

    # PyTorch-style U(-1/sqrt(H), 1/sqrt(H)) init, PyTorch weight layouts.
    bound = 1.0 / jnp.sqrt(jnp.float32(HIDDEN_SIZE))
    w_ih = jax.random.uniform(k1, (HIDDEN_SIZE, VOCAB_SIZE), jnp.float32, -bound, bound)
    w_hh = jax.random.uniform(k2, (HIDDEN_SIZE, HIDDEN_SIZE), jnp.float32, -bound, bound)
    b_ih = jax.random.uniform(k3, (HIDDEN_SIZE,), jnp.float32, -bound, bound)
    b_hh = jax.random.uniform(k4, (HIDDEN_SIZE,), jnp.float32, -bound, bound)
    w_fc = jax.random.uniform(k5, (NUM_CLASSES, HIDDEN_SIZE), jnp.float32, -bound, bound)
    b_fc = jax.random.uniform(k6, (NUM_CLASSES,), jnp.float32, -bound, bound)

    # Pack parameters ONCE (model init), then reuse for every forward call.
    p_rnn, p_fc = pack_position_predictor_params(w_ih, w_hh, b_ih, b_hh, w_fc, b_fc)
    p_rnn, p_fc = jax.block_until_ready((p_rnn, p_fc))

    fwd = jax.jit(position_predictor_forward)
    out = fwd(x, p_rnn, p_fc)
    out = jax.block_until_ready(out)

    ref = _reference_forward(x, w_ih, w_hh, b_ih, b_hh, w_fc, b_fc)
    assert out.shape == (B, NUM_CLASSES)
    assert jnp.allclose(out, ref, atol=1e-4, rtol=1e-4), "mismatch vs JAX reference"

    print("KERNEL_OK")
</pallas_src>

<mosaic_0001>
module attributes {stable_mosaic.version = 11 : i64} {
  func.func @rnn_fc_kernel(%arg0: i32, %arg1: memref<8x5x26xf32, #tpu.memory_space<vmem>>, %arg2: memref<72x32xf32, #tpu.memory_space<vmem>>, %arg3: memref<40x128xf32, #tpu.memory_space<vmem>>, %arg4: memref<8x128xf32, #tpu.memory_space<vmem>>) attributes {dimension_semantics = [#tpu.dimension_semantics<parallel>], iteration_bounds = array<i64: 1>, scalar_prefetch = 0 : i64, scratch_operands = 0 : i64, tpu.core_type = #tpu.core_type<tc>, window_params = [{transform_indices = @transform_0, window_bounds = array<i64: 8, 5, 26>}, {pipeline_mode = #tpu.pipeline_mode<synchronous>, transform_indices = @transform_1, window_bounds = array<i64: 72, 32>}, {pipeline_mode = #tpu.pipeline_mode<synchronous>, transform_indices = @transform_2, window_bounds = array<i64: 40, 128>}, {transform_indices = @transform_3, window_bounds = array<i64: 8, 128>}]} {
    %c0 = arith.constant 0 : index
    %c0_0 = arith.constant 0 : index
    %0 = vector.load %arg2[%c0, %c0_0] : memref<72x32xf32, #tpu.memory_space<vmem>>, vector<26x32xf32>
    %c32 = arith.constant 32 : index
    %c0_1 = arith.constant 0 : index
    %1 = vector.load %arg2[%c32, %c0_1] : memref<72x32xf32, #tpu.memory_space<vmem>>, vector<32x32xf32>
    %c64 = arith.constant 64 : index
    %c0_2 = arith.constant 0 : index
    %2 = vector.load %arg2[%c64, %c0_2] : memref<72x32xf32, #tpu.memory_space<vmem>>, vector<1x32xf32>
    %c0_3 = arith.constant 0 : index
    %c0_4 = arith.constant 0 : index
    %c0_5 = arith.constant 0 : index
    %3 = vector.load %arg1[%c0_3, %c0_4, %c0_5] : memref<8x5x26xf32, #tpu.memory_space<vmem>>, vector<8x5x26xf32>
    %4 = vector.extract_strided_slice %3 {offsets = [0, 0, 0], sizes = [8, 1, 26], strides = [1, 1, 1]} : vector<8x5x26xf32> to vector<8x1x26xf32>
    %5 = vector.shape_cast %4 : vector<8x1x26xf32> to vector<8x26xf32>
    %cst = arith.constant dense<0.000000e+00> : vector<8x32xf32>
    %6 = tpu.matmul %5, %0, %cst {dimension_numbers = #tpu.dot_dimension_numbers<[1], [0], [0], [1], [0, 0, 1, 1], [], []>, precision = #tpu.contract_precision<fp32>} : vector<8x26xf32>, vector<26x32xf32>, vector<8x32xf32> -> vector<8x32xf32>
    %7 = vector.broadcast %2 : vector<1x32xf32> to vector<8x32xf32>
    %8 = arith.addf %6, %7 : vector<8x32xf32>
    %9 = vector.extract_strided_slice %3 {offsets = [0, 1, 0], sizes = [8, 1, 26], strides = [1, 1, 1]} : vector<8x5x26xf32> to vector<8x1x26xf32>
    %10 = vector.shape_cast %9 : vector<8x1x26xf32> to vector<8x26xf32>
    %cst_6 = arith.constant dense<0.000000e+00> : vector<8x32xf32>
    %11 = tpu.matmul %10, %0, %cst_6 {dimension_numbers = #tpu.dot_dimension_numbers<[1], [0], [0], [1], [0, 0, 1, 1], [], []>, precision = #tpu.contract_precision<fp32>} : vector<8x26xf32>, vector<26x32xf32>, vector<8x32xf32> -> vector<8x32xf32>
    %12 = vector.broadcast %2 : vector<1x32xf32> to vector<8x32xf32>
    %13 = arith.addf %11, %12 : vector<8x32xf32>
    %14 = vector.extract_strided_slice %3 {offsets = [0, 2, 0], sizes = [8, 1, 26], strides = [1, 1, 1]} : vector<8x5x26xf32> to vector<8x1x26xf32>
    %15 = vector.shape_cast %14 : vector<8x1x26xf32> to vector<8x26xf32>
    %cst_7 = arith.constant dense<0.000000e+00> : vector<8x32xf32>
    %16 = tpu.matmul %15, %0, %cst_7 {dimension_numbers = #tpu.dot_dimension_numbers<[1], [0], [0], [1], [0, 0, 1, 1], [], []>, precision = #tpu.contract_precision<fp32>} : vector<8x26xf32>, vector<26x32xf32>, vector<8x32xf32> -> vector<8x32xf32>
    %17 = vector.broadcast %2 : vector<1x32xf32> to vector<8x32xf32>
    %18 = arith.addf %16, %17 : vector<8x32xf32>
    %19 = vector.extract_strided_slice %3 {offsets = [0, 3, 0], sizes = [8, 1, 26], strides = [1, 1, 1]} : vector<8x5x26xf32> to vector<8x1x26xf32>
    %20 = vector.shape_cast %19 : vector<8x1x26xf32> to vector<8x26xf32>
    %cst_8 = arith.constant dense<0.000000e+00> : vector<8x32xf32>
    %21 = tpu.matmul %20, %0, %cst_8 {dimension_numbers = #tpu.dot_dimension_numbers<[1], [0], [0], [1], [0, 0, 1, 1], [], []>, precision = #tpu.contract_precision<fp32>} : vector<8x26xf32>, vector<26x32xf32>, vector<8x32xf32> -> vector<8x32xf32>
    %22 = vector.broadcast %2 : vector<1x32xf32> to vector<8x32xf32>
    %23 = arith.addf %21, %22 : vector<8x32xf32>
    %24 = vector.extract_strided_slice %3 {offsets = [0, 4, 0], sizes = [8, 1, 26], strides = [1, 1, 1]} : vector<8x5x26xf32> to vector<8x1x26xf32>
    %25 = vector.shape_cast %24 : vector<8x1x26xf32> to vector<8x26xf32>
    %cst_9 = arith.constant dense<0.000000e+00> : vector<8x32xf32>
    %26 = tpu.matmul %25, %0, %cst_9 {dimension_numbers = #tpu.dot_dimension_numbers<[1], [0], [0], [1], [0, 0, 1, 1], [], []>, precision = #tpu.contract_precision<fp32>} : vector<8x26xf32>, vector<26x32xf32>, vector<8x32xf32> -> vector<8x32xf32>
    %27 = vector.broadcast %2 : vector<1x32xf32> to vector<8x32xf32>
    %28 = arith.addf %26, %27 : vector<8x32xf32>
    %29 = math.tanh %8 : vector<8x32xf32>
    %cst_10 = arith.constant dense<0.000000e+00> : vector<8x32xf32>
    %30 = tpu.matmul %29, %1, %cst_10 {dimension_numbers = #tpu.dot_dimension_numbers<[1], [0], [0], [1], [0, 0, 1, 1], [], []>, precision = #tpu.contract_precision<fp32>} : vector<8x32xf32>, vector<32x32xf32>, vector<8x32xf32> -> vector<8x32xf32>
    %31 = arith.addf %13, %30 : vector<8x32xf32>
    %32 = math.tanh %31 : vector<8x32xf32>
    %cst_11 = arith.constant dense<0.000000e+00> : vector<8x32xf32>
    %33 = tpu.matmul %32, %1, %cst_11 {dimension_numbers = #tpu.dot_dimension_numbers<[1], [0], [0], [1], [0, 0, 1, 1], [], []>, precision = #tpu.contract_precision<fp32>} : vector<8x32xf32>, vector<32x32xf32>, vector<8x32xf32> -> vector<8x32xf32>
    %34 = arith.addf %18, %33 : vector<8x32xf32>
    %35 = math.tanh %34 : vector<8x32xf32>
    %cst_12 = arith.constant dense<0.000000e+00> : vector<8x32xf32>
    %36 = tpu.matmul %35, %1, %cst_12 {dimension_numbers = #tpu.dot_dimension_numbers<[1], [0], [0], [1], [0, 0, 1, 1], [], []>, precision = #tpu.contract_precision<fp32>} : vector<8x32xf32>, vector<32x32xf32>, vector<8x32xf32> -> vector<8x32xf32>
    %37 = arith.addf %23, %36 : vector<8x32xf32>
    %38 = math.tanh %37 : vector<8x32xf32>
    %cst_13 = arith.constant dense<0.000000e+00> : vector<8x32xf32>
    %39 = tpu.matmul %38, %1, %cst_13 {dimension_numbers = #tpu.dot_dimension_numbers<[1], [0], [0], [1], [0, 0, 1, 1], [], []>, precision = #tpu.contract_precision<fp32>} : vector<8x32xf32>, vector<32x32xf32>, vector<8x32xf32> -> vector<8x32xf32>
    %40 = arith.addf %28, %39 : vector<8x32xf32>
    %41 = math.tanh %40 : vector<8x32xf32>
    %c0_14 = arith.constant 0 : index
    %c0_15 = arith.constant 0 : index
    %42 = vector.load %arg3[%c0_14, %c0_15] : memref<40x128xf32, #tpu.memory_space<vmem>>, vector<32x128xf32>
    %c32_16 = arith.constant 32 : index
    %c0_17 = arith.constant 0 : index
    %43 = vector.load %arg3[%c32_16, %c0_17] : memref<40x128xf32, #tpu.memory_space<vmem>>, vector<1x128xf32>
    %cst_18 = arith.constant dense<0.000000e+00> : vector<8x128xf32>
    %44 = tpu.matmul %41, %42, %cst_18 {dimension_numbers = #tpu.dot_dimension_numbers<[1], [0], [0], [1], [0, 0, 1, 1], [], []>, precision = #tpu.contract_precision<fp32>} : vector<8x32xf32>, vector<32x128xf32>, vector<8x128xf32> -> vector<8x128xf32>
    %45 = vector.broadcast %43 : vector<1x128xf32> to vector<8x128xf32>
    %46 = arith.addf %44, %45 : vector<8x128xf32>
    %c0_19 = arith.constant 0 : index
    %c0_20 = arith.constant 0 : index
    %47 = vector.load %arg4[%c0_19, %c0_20] : memref<8x128xf32, #tpu.memory_space<vmem>>, vector<8x128xf32>
    tpu.vector_store %arg4[%c0_19, %c0_20], %46 {strides = array<i32>} : memref<8x128xf32, #tpu.memory_space<vmem>>, vector<8x128xf32>,
    return
  }
  func.func @transform_0(%arg0: i32) -> (i32, i32, i32) {
    %c0_i32 = arith.constant 0 : i32
    %c0_i32_0 = arith.constant 0 : i32
    %c0_i32_1 = arith.constant 0 : i32
    return %arg0, %c0_i32, %c0_i32_0 : i32, i32, i32
  }
  func.func @transform_1(%arg0: i32) -> (i32, i32) {
    %c0_i32 = arith.constant 0 : i32
    %c0_i32_0 = arith.constant 0 : i32
    %c0_i32_1 = arith.constant 0 : i32
    return %c0_i32, %c0_i32_0 : i32, i32
  }
  func.func @transform_2(%arg0: i32) -> (i32, i32) {
    %c0_i32 = arith.constant 0 : i32
    %c0_i32_0 = arith.constant 0 : i32
    %c0_i32_1 = arith.constant 0 : i32
    return %c0_i32, %c0_i32_0 : i32, i32
  }
  func.func @transform_3(%arg0: i32) -> (i32, i32) {
    %c0_i32 = arith.constant 0 : i32
    %c0_i32_0 = arith.constant 0 : i32
    return %arg0, %c0_i32 : i32, i32
  }
}

</mosaic_0001>

<bundles_post_ra>
// kernel: position_predictor_forward.1
= control target key start
LH: loop header
LB: loop body
LE: loop exit
PB: predicated region body
PF: predicated region fallthrough
CT: control target
= control target key end

     0   :  { %vm68_vm0 = vcmask 1041408   ;;  %v6509_v3 = vmov 0.0|0.0   ;;  %vm6510_vm1 = vmmov 0   ;;  %v6511_v9 = vmov 0.0   ;;  %s7168_s0 = inlined_call_operand.vmem [shape: f32[8,5,26], index: 0, kind: input, shape index: {}]   ;;  %s7169_s1 = inlined_call_operand.vmem [shape: f32[72,32], index: 1, kind: input, shape index: {}]   ;;  %s7170_s2 = inlined_call_operand.vmem [shape: f32[40,128], index: 2, kind: input, shape index: {}]   ;;  %s7171_s3 = inlined_call_operand.hbm [shape: f32[8,128], index: 3, kind: output, shape index: {}]  }
   0x1   :  { %v15_v0 = vld [vmem:[%s7169_s1] sm:$0xff]  ;;  %v16_v1 = vld [vmem:[%s7169_s1 + $0x8] sm:$0xff]  ;;  %v17_v2 = vld [vmem:[%s7169_s1 + $0x10] sm:$0xff]  ;;  %5997 = vmatprep.subr.bf16.mxu0 %v6509_v3  ;;  %6033 = vmatprep.subr.bf16.mxu1 %v6509_v3  ;;  %vm45_vm2 = vcmask 1041409   ;;  %vm48_vm3 = vcmask 1042434   ;;  %vm51_vm4 = vcmask 1043459  }
   0x2   :  { %v73_v4 = vand.u32 4294901760, %v15_v0  ;;  %v76_v5 = vand.u32 4294901760, %v16_v1  ;;  %v18_v6 = vld [vmem:[%s7169_s1 + $0x18] sm:$0x3]  ;;  %v79_v7 = vand.u32 4294901760, %v17_v2  ;;  %5345 = vmatprep.mubr.msk.f32.mxu0 %vm6510_vm1, %v6511_v9  ;;  %5411 = vmatprep.mubr.msk.f32.mxu1 %vm6510_vm1, %v6511_v9  ;;  %vm54_vm5 = vcmask 1044484  }
   0x3   :  { %v70_v8 = vsel %vm68_vm0, %v18_v6, 0  ;;  %v6552_v10 = vld [vmem:[%s7168_s0] sm:$0x1f]  ;;  %v6557_v11 = vld [vmem:[%s7168_s0 + $0x8] sm:$0x1f] }
   0x4   :  { %v6561_v12 = vpack.c.bf16 %v76_v5, %v73_v4  ;;  %v82_v13 = vand.u32 4294901760, %v70_v8  ;;  %v6566_v14 = vld [vmem:[%s7168_s0 + $0x10] sm:$0x1f]  ;;  %v6571_v15 = vld [vmem:[%s7168_s0 + $0x18] sm:$0x1f]  ;;  %v44_v16 = vrot.slane %v6557_v11, 7  ;;  %v6589_v20 = vsub.f32 %v15_v0, %v73_v4 }
   0x5   :  { %v6577_v17 = vld [vmem:[%s7168_s0 + $0x20] sm:$0x1f]  ;;  %v6582_v18 = vld [vmem:[%s7168_s0 + $0x28] sm:$0x1f]  ;;  %v6587_v19 = vld [vmem:[%s7168_s0 + $0x30] sm:$0x1f]  ;;  %v6591_v21 = vsub.f32 %v16_v1, %v76_v5  ;;  %v6593_v22 = vsub.f32 %v17_v2, %v79_v7 }
   0x6   :  { %5999 = vmatpush3.bf16.msra.mxu0 %v6561_v12  ;;  %v6596_v23 = vpack.c.bf16 %v82_v13, %v79_v7  ;;  %v6601_v24 = vld [vmem:[%s7168_s0 + $0x38] sm:$0x1f]  ;;  %v46_v25 = vsel %vm45_vm2, %v44_v16, %v6552_v10  ;;  %v47_v26 = vrot.slane %v6566_v14, 6  ;;  %6035 = vmatpush3.bf16.msra.mxu1 %v6561_v12  ;;  %v50_v27 = vrot.slane %v6571_v15, 5 }
   0x7   :  { %6000 = vmatprep.subr.bf16.mxu0 %v6509_v3  ;;  %v53_v28 = vrot.slane %v6577_v17, 4  ;;  %6036 = vmatprep.subr.bf16.mxu1 %v6509_v3 }
   0x8   :  { %8 = vsyncpa [#allocation3], 0  ;;  %v49_v29 = vsel %vm48_vm3, %v47_v26, %v46_v25  ;;  %v56_v30 = vrot.slane %v6582_v18, 3  ;;  %vm57_vm6 = vcmask 1045509   ;;  %v59_v31 = vrot.slane %v6587_v19, 2  ;;  %s6512_s27 = smov [#allocation2]  }
   0x9   :  { %v52_v32 = vsel %vm51_vm4, %v50_v27, %v49_v29  ;;  %vm60_vm7 = vcmask 1046534   ;;  %v62_v33 = vrot.slane %v6601_v24, 1  ;;  %vm63_vm8 = vcmask 1047559   ;;  %s5027_s28 = sshll.u32 %s6512_s27, 4  ;;  %s5028_s28 = int_to_ptr.vmem [resolvable:$true] %s5027_s28 }
   0xa   :  { %6002 = vmatpush3.bf16.msra.mxu0 %v6596_v23  ;;  %v55_v34 = vsel %vm54_vm5, %v53_v28, %v52_v32  ;;  %v154_v35 = vand.u32 4294901760, %v6589_v20  ;;  %v161_v36 = vand.u32 4294901760, %v6591_v21  ;;  %6038 = vmatpush3.bf16.msra.mxu1 %v6596_v23  ;;  %vm65_vm9 = vcmask 211968   ;;  %s6485_s29 = scalar_lea.vmem %s5028_s28, 128  ;;  %p6490_p1 = scmp.lt.s32.totalorder %s5028_s28, %s5028_s28 }
   0xb   :  { %6003 = vmatprep.subr.bf16.mxu0 %v6509_v3  ;;  %v58_v37 = vsel %vm57_vm6, %v56_v30, %v55_v34  ;;  %v6623_v38 = vsub.f32 %v70_v8, %v82_v13  ;;  %6039 = vmatprep.subr.bf16.mxu1 %v6509_v3  ;;  %v168_v40 = vand.u32 4294901760, %v6593_v22  ;;  %v557_v46 = vrot.slane %v6552_v10, 1  ;;  %p6486_p0 = scmp.ne.s32.totalorder %s5028_s28, %s6485_s29  ;;  %p6491_p2 = scmp.lt.s32.totalorder %s6485_s29, %s6485_s29 }
   0xc   :  { %v61_v39 = vsel %vm60_vm7, %v59_v31, %v58_v37  ;;  %v155_v42 = vsub.f32 %v6589_v20, %v154_v35  ;;  %v162_v44 = vsub.f32 %v6591_v21, %v161_v36  ;;  %v559_v50 = vrot.slane %v6566_v14, 7 }
   0xd   :  { %v64_v41 = vsel %vm63_vm8, %v62_v33, %v61_v39  ;;  %v175_v45 = vand.u32 4294901760, %v6623_v38  ;;  %v169_v48 = vsub.f32 %v6593_v22, %v168_v40  ;;  %v558_v49 = vsel %vm45_vm2, %v6557_v11, %v557_v46  ;;  %p6492_p3 = por %p6491_p2, %p6490_p1 }
   0xe   :  { %v66_v43 = vsel %vm65_vm9, %v64_v41, 0  ;;  %v561_v51 = vrot.slane %v6571_v15, 6  ;;  %v156_v53 = vand.u32 4294901760, %v155_v42  ;;  %v563_v54 = vrot.slane %v6577_v17, 5 }
   0xf   :  { %v6638_v47 = vand.u32 4294901760, %v66_v43  ;;  %v565_v55 = vrot.slane %v6582_v18, 4  ;;  %v163_v56 = vand.u32 4294901760, %v162_v44  ;;  %v176_v57 = vsub.f32 %v6623_v38, %v175_v45  ;;  %p6493_p4 = pnand %p6492_p3, %p6486_p0 }
  0x10   :  { %v560_v58 = vsel %vm48_vm3, %v559_v50, %v558_v49  ;;  %v567_v59 = vrot.slane %v6587_v19, 3  ;;  %v569_v62 = vrot.slane %v6601_v24, 2  ;;  %v170_v4 = vand.u32 4294901760, %v169_v48 }
  0x11   :  { %v6648_v52 = vsub.f32 %v66_v43, %v6638_v47  ;;  %v562_v61 = vsel %vm51_vm4, %v561_v51, %v560_v58  ;;  %v6663_v2 = vpack.c.bf16 %v163_v56, %v156_v53  ;;  %v177_v5 = vand.u32 4294901760, %v176_v57  ;;  %v19_v51 = vld [vmem:[%s7169_s1 + $0x20] sm:$0xff]  ;;  %v22_v56 = vld [vmem:[%s7169_s1 + $0x38] sm:$0xff] }
  0x12   :  { %v564_v63 = vsel %vm54_vm5, %v563_v54, %v562_v61  ;;  %v6683_v28 = vpack.c.bf16 %v6591_v21, %v6589_v20  ;;  %v6691_v31 = vpack.c.bf16 %v6623_v38, %v6593_v22  ;;  %v1559_v32 = vrot.slane %v6552_v10, 3 }
  0x13   :  { %v143_v60 = vand.u32 4294901760, %v6648_v52  ;;  %v566_v1 = vsel %vm57_vm6, %v565_v55, %v564_v63  ;;  %v6671_v25 = vpack.c.bf16 %v177_v5, %v170_v4  ;;  %v1560_v33 = vrot.slane %v6557_v11, 2  ;;  %v21_v55 = vld [vmem:[%s7169_s1 + $0x30] sm:$0xff] }
  0x14   :  { %v568_v6 = vsel %vm60_vm7, %v567_v59, %v566_v1  ;;  %v1562_v34 = vrot.slane %v6566_v14, 1  ;;  %v1565_v41 = vrot.slane %v6577_v17, 7  ;;  %v6727_v43 = vpack.c.bf16 %v161_v36, %v154_v35 }
  0x15   :  { %v144_v0 = vsub.f32 %v6648_v52, %v143_v60  ;;  %v570_v8 = vsel %vm63_vm8, %v569_v62, %v568_v6  ;;  %v1561_v37 = vsel %vm45_vm2, %v1560_v33, %v1559_v32  ;;  %v1567_v44 = vrot.slane %v6582_v18, 6 }
  0x16   :  { %v571_v13 = vsel %vm65_vm9, %v570_v8, 0  ;;  %v1563_v39 = vsel %vm48_vm3, %v1562_v34, %v1561_v37  ;;  %v6739_v20 = vpack.c.bf16 %v175_v45, %v168_v40  ;;  %v1569_v21 = vrot.slane %v6587_v19, 5 }
  0x17   :  { %v145_v7 = vand.u32 4294901760, %v144_v0  ;;  %v6668_v16 = vand.u32 4294901760, %v571_v13  ;;  %v1564_v42 = vsel %vm51_vm4, %v6571_v15, %v1563_v39  ;;  %v1571_v22 = vrot.slane %v6601_v24, 4 }
  0x18   :  { %v1566_v46 = vsel %vm54_vm5, %v1565_v41, %v1564_v42  ;;  %v2567_v53 = vand.u32 4294901760, %v19_v51  ;;  %v2573_v58 = vand.u32 4294901760, %v21_v55  ;;  %v2576_v59 = vand.u32 4294901760, %v22_v56 }
  0x19   :  { %5346 = vmatmul.mubr.f32.vlgmr.msra.gmra.mrb[0].mxu0 %v145_v7  ;;  %v6677_v26 = vsub.f32 %v571_v13, %v6668_v16  ;;  %v1568_v35 = vsel %vm57_vm6, %v1567_v44, %v1566_v46  ;;  %v1058_v42 = vrot.slane %v6552_v10, 2  ;;  %v1059_v44 = vrot.slane %v6557_v11, 1 }
  0x1a   :  { %6005 = vmatpush3.bf16.msra.mxu0 %v6663_v2  ;;  %5356 = vmatprep.mubr.msk.f32.mxu0 %vm6510_vm1, %v6511_v9  ;;  %v1570_v36 = vsel %vm60_vm7, %v1569_v21, %v1568_v35  ;;  %v6840_v62 = vpack.c.bf16 %v2576_v59, %v2573_v58  ;;  %v2661_v4 = vsub.f32 %v21_v55, %v2573_v58  ;;  %v1062_v46 = vrot.slane %v6571_v15, 7 }
  0x1b   :  { %6006 = vmatprep.subr.bf16.mxu0 %v6509_v3  ;;  %v644_v27 = vand.u32 4294901760, %v6677_v26  ;;  %v1572_v38 = vsel %vm63_vm8, %v1571_v22, %v1570_v36  ;;  %v2668_v5 = vsub.f32 %v22_v56, %v2576_v59  ;;  %v1064_v21 = vrot.slane %v6577_v17, 6 }
  0x1c   :  { %v1573_v40 = vsel %vm65_vm9, %v1572_v38, 0  ;;  %v2662_v8 = vand.u32 4294901760, %v2661_v4  ;;  %v1060_v35 = vsel %vm45_vm2, %v1059_v44, %v1058_v42  ;;  %v1066_v22 = vrot.slane %v6582_v18, 5 }
  0x1d   :  { %v645_v29 = vsub.f32 %v6677_v26, %v644_v27  ;;  %v1644_v45 = vand.u32 4294901760, %v1573_v40  ;;  %v2669_v13 = vand.u32 4294901760, %v2668_v5  ;;  %v6851_v37 = vpack.c.bf16 %v2668_v5, %v2661_v4 }
  0x1e   :  { %6008 = vmatpush3.bf16.msra.mxu0 %v6671_v25  ;;  %v1061_v36 = vsel %vm48_vm3, %v6566_v14, %v1060_v35  ;;  %v1068_v38 = vrot.slane %v6587_v19, 4  ;;  %v2060_v58 = vrot.slane %v6552_v10, 4  ;;  %v2061_v59 = vrot.slane %v6557_v11, 3 }
  0x1f   :  { %6009 = vmatprep.subr.bf16.mxu0 %v6509_v3  ;;  %v646_v30 = vand.u32 4294901760, %v645_v29  ;;  %v1645_v48 = vsub.f32 %v1573_v40, %v1644_v45  ;;  %v6855_v41 = vpack.c.bf16 %v2669_v13, %v2662_v8  ;;  %v1063_v40 = vsel %vm51_vm4, %v1062_v46, %v1061_v36 }
  0x20   :  { %vm2562_vm10 = vcmask 261120  }
  0x21   :  { %5357 = vmatmul.mubr.f32.vlgmr.msra.gmra.mrb[0].mxu0 %v6638_v47  ;;  %5412 = vmatmul.mubr.f32.vlgmr.msra.gmra.mrb[0].mxu1 %v646_v30 }
  0x22   :  { %6011 = vmatpush3.bf16.msra.mxu0 %v6683_v28  ;;  %5367 = vmatprep.mubr.msk.f32.mxu0 %vm6510_vm1, %v6511_v9 }
  0x23   :  { %6012 = vmatprep.subr.bf16.mxu0 %v6509_v3  ;;  %6041 = vmatpush3.bf16.msra.mxu1 %v6663_v2 }
  0x24   :  { %5422 = vmatprep.mubr.msk.f32.mxu1 %vm6510_vm1, %v6511_v9  ;;  %6042 = vmatprep.subr.bf16.mxu1 %v6509_v3 }
  0x26   :  { %6014 = vmatpush3.bf16.msra.mxu0 %v6691_v31 }
  0x27   :  { %6015 = vmatprep.subr.bf16.mxu0 %v6509_v3  ;;  %6044 = vmatpush3.bf16.msra.mxu1 %v6671_v25 }
  0x28   :  { %6045 = vmatprep.subr.bf16.mxu1 %v6509_v3 }
  0x29   :  { %5368 = vmatmul.mubr.f32.vlgmr.msra.gmra.mrb[0].mxu0 %v6648_v52  ;;  %v20_v52 = vld [vmem:[%s7169_s1 + $0x28] sm:$0xff] }
  0x2a   :  { %6017 = vmatpush3.bf16.msra.mxu0 %v6561_v12  ;;  %5378 = vmatprep.mubr.msk.f32.mxu0 %vm6510_vm1, %v6511_v9  ;;  %v2570_v54 = vand.u32 4294901760, %v20_v52 }
  0x2b   :  { %6018 = vmatprep.subr.bf16.mxu0 %v6509_v3  ;;  %5423 = vmatmul.mubr.f32.vlgmr.msra.gmra.mrb[0].mxu1 %v6668_v16 }
  0x2c   :  { %6047 = vmatpush3.bf16.msra.mxu1 %v6683_v28  ;;  %5433 = vmatprep.mubr.msk.f32.mxu1 %vm6510_vm1, %v6511_v9  ;;  %v6837_v57 = vpack.c.bf16 %v2570_v54, %v2567_v53  ;;  %v2654_v61 = vsub.f32 %v20_v52, %v2570_v54 }
  0x2d   :  { %6048 = vmatprep.subr.bf16.mxu1 %v6509_v3 }
  0x2e   :  { %6020 = vmatpush3.bf16.msra.mxu0 %v6596_v23  ;;  %v2655_v0 = vand.u32 4294901760, %v2654_v61 }
  0x2f   :  { %6021 = vmatprep.subr.bf16.mxu0 %v6509_v3 }
  0x30   :  { %6050 = vmatpush3.bf16.msra.mxu1 %v6691_v31  ;;  %v2656_v6 = vsub.f32 %v2654_v61, %v2655_v0 }
  0x31   :  { %5379 = vmatmul.mubr.f32.vlgmr.msra.gmra.mrb[0].mxu0 %v143_v60  ;;  %6051 = vmatprep.subr.bf16.mxu1 %v6509_v3  ;;  %v2647_v60 = vsub.f32 %v19_v51, %v2567_v53 }
  0x32   :  { %6023 = vmatpush3.bf16.msra.mxu0 %v6727_v43  ;;  %5389 = vmatprep.mubr.msk.f32.mxu0 %vm6510_vm1, %v6511_v9 }
  0x33   :  { %6024 = vmatprep.subr.bf16.mxu0 %v6509_v3  ;;  %5434 = vmatmul.mubr.f32.vlgmr.msra.gmra.mrb[0].mxu1 %v6677_v26  ;;  %v2648_v63 = vand.u32 4294901760, %v2647_v60  ;;  %v2663_v26 = vsub.f32 %v2661_v4, %v2662_v8  ;;  %v6849_v34 = vpack.c.bf16 %v2654_v61, %v2647_v60  ;;  %v2062_v61 = vsel %vm45_vm2, %v2061_v59, %v2060_v58  ;;  %v6925_v8 = vld [vmem:[%s7169_s1 + $0x40] ss:$0 sm:$0xff] }
  0x34   :  { %6053 = vmatpush3.bf16.msra.mxu1 %v6561_v12  ;;  %5444 = vmatprep.mubr.msk.f32.mxu1 %vm6510_vm1, %v6511_v9 }
  0x35   :  { %6054 = vmatprep.subr.bf16.mxu1 %v6509_v3  ;;  %v2649_v1 = vsub.f32 %v2647_v60, %v2648_v63  ;;  %v2664_v30 = vand.u32 4294901760, %v2663_v26  ;;  %v6853_v39 = vpack.c.bf16 %v2655_v0, %v2648_v63  ;;  %v2063_v60 = vrot.slane %v6566_v14, 2 }
  0x36   :  { %6026 = vmatpush3.bf16.msra.mxu0 %v6739_v20  ;;  %v2065_v63 = vrot.slane %v6571_v15, 1  ;;  %v2068_v14 = vrot.slane %v6582_v18, 7  ;;  %v2070_v15 = vrot.slane %v6587_v19, 6  ;;  %v2072_v18 = vrot.slane %v6601_v24, 5 }
  0x37   :  { %6027 = vmatprep.subr.bf16.mxu0 %v6509_v3  ;;  %v2650_v7 = vand.u32 4294901760, %v2649_v1  ;;  %v2064_v10 = vsel %vm48_vm3, %v2063_v60, %v2062_v61 }
  0x38   :  { %6056 = vmatpush3.bf16.msra.mxu1 %v6596_v23  ;;  %v2066_v11 = vsel %vm51_vm4, %v2065_v63, %v2064_v10 }
  0x39   :  { %5390 = vmatmul.mubr.f32.vlgmr.msra.gmra.mrb[0].mxu0 %v6638_v47  ;;  %6057 = vmatprep.subr.bf16.mxu1 %v6509_v3  ;;  %v2067_v0 = vsel %vm54_vm5, %v6577_v17, %v2066_v11 }
  0x3a   :  { %6029 = vmatpush3.bf16.msra.mxu0 %v6561_v12  ;;  %5400 = vmatprep.mubr.msk.f32.mxu0 %vm6510_vm1, %v6511_v9  ;;  %v2069_v1 = vsel %vm57_vm6, %v2068_v14, %v2067_v0 }
  0x3b   :  { %6030 = vmatprep.subr.bf16.mxu0 %v6509_v3  ;;  %5445 = vmatmul.mubr.f32.vlgmr.msra.gmra.mrb[0].mxu1 %v644_v27  ;;  %v2670_v27 = vsub.f32 %v2668_v5, %v2669_v13  ;;  %v2071_v4 = vsel %vm60_vm7, %v2070_v15, %v2069_v1 }
  0x3c   :  { %6059 = vmatpush3.bf16.msra.mxu1 %v6727_v43  ;;  %5455 = vmatprep.mubr.msk.f32.mxu1 %vm6510_vm1, %v6511_v9  ;;  %v2073_v17 = vsel %vm63_vm8, %v2072_v18, %v2071_v4 }
  0x3d   :  { %6060 = vmatprep.subr.bf16.mxu1 %v6509_v3  ;;  %v2671_v32 = vand.u32 4294901760, %v2670_v27  ;;  %v2074_v19 = vsel %vm65_vm9, %v2073_v17, 0 }
  0x3e   :  { %6032 = vmatpush3.bf16.msra.mxu0 %v6596_v23  ;;  %v6911_v5 = vand.u32 4294901760, %v2074_v19 }
  0x3f   :  { %6069 = vmatprep.subr.bf16.mxu0 %v6509_v3  ;;  %v6847_v33 = vpack.c.bf16 %v2671_v32, %v2664_v30 }
  0x40   :  { %6062 = vmatpush3.bf16.msra.mxu1 %v6739_v20 }
  0x41   :  { %5401 = vmatmul.mubr.f32.vlgmr.msra.gmra.mrb[0].mxu0 %v6638_v47  ;;  %6063 = vmatprep.subr.bf16.mxu1 %v6509_v3  ;;  %v1646_v47 = vand.u32 4294901760, %v1645_v48 }
  0x42   :  { %6071 = vmatpush3.bf16.msra.mxu0 %v6561_v12  ;;  %5477 = vmatprep.mubr.msk.f32.mxu0 %vm6510_vm1, %v6511_v9 }
  0x43   :  { %5456 = vmatmul.mubr.f32.vlgmr.msra.gmra.mrb[0].mxu1 %v6668_v16  ;;  %6072 = vmatprep.subr.bf16.mxu0 %v6509_v3  ;;  %v1647_v49 = vsub.f32 %v1645_v48, %v1646_v47 }
  0x44   :  { %6065 = vmatpush3.bf16.msra.mxu1 %v6561_v12  ;;  %5466 = vmatprep.mubr.msk.f32.mxu1 %vm6510_vm1, %v6511_v9 }
  0x45   :  { %6066 = vmatprep.subr.bf16.mxu1 %v6509_v3  ;;  %v1648_v50 = vand.u32 4294901760, %v1647_v49 }
  0x46   :  { %6074 = vmatpush3.bf16.msra.mxu0 %v6596_v23 }
  0x47   :  { %6075 = vmatprep.subr.bf16.mxu0 %v6509_v3 }
  0x48   :  { %6068 = vmatpush3.bf16.msra.mxu1 %v6596_v23 }
  0x49   :  { %6105 = vmatprep.subr.bf16.mxu1 %v6509_v3 }
  0x4b   :  { %5467 = vmatmul.mubr.f32.vlgmr.msra.gmra.mrb[0].mxu1 %v6668_v16  ;;  %v2657_v16 = vand.u32 4294901760, %v2656_v6 }
  0x4c   :  { %6107 = vmatpush3.bf16.msra.mxu1 %v6561_v12  ;;  %5543 = vmatprep.mubr.msk.f32.mxu1 %vm6510_vm1, %v6511_v9 }
  0x4d   :  { %6108 = vmatprep.subr.bf16.mxu1 %v6509_v3  ;;  %v6845_v29 = vpack.c.bf16 %v2657_v16, %v2650_v7 }
  0x50   :  { %6110 = vmatpush3.bf16.msra.mxu1 %v6596_v23 }
  0x51   :  { %6111 = vmatprep.subr.bf16.mxu1 %v6509_v3 }
  0x53   :  { %5544 = vmatmul.mubr.f32.vlgmr.msra.gmra.mrb[2].mxu1 %v1648_v50 }
  0x54   :  { %6113 = vmatpush3.bf16.msra.mxu1 %v6663_v2  ;;  %5554 = vmatprep.mubr.msk.f32.mxu1 %vm6510_vm1, %v6511_v9 }
  0x55   :  { %6114 = vmatprep.subr.bf16.mxu1 %v6509_v3 }
  0x58   :  { %6116 = vmatpush3.bf16.msra.mxu1 %v6671_v25 }
  0x59   :  { %6117 = vmatprep.subr.bf16.mxu1 %v6509_v3 }
  0x5b   :  { %5555 = vmatmul.mubr.f32.vlgmr.msra.gmra.mrb[2].mxu1 %v1644_v45 }
  0x5c   :  { %6119 = vmatpush3.bf16.msra.mxu1 %v6683_v28  ;;  %5565 = vmatprep.mubr.msk.f32.mxu1 %vm6510_vm1, %v6511_v9 }
  0x5d   :  { %6120 = vmatprep.subr.bf16.mxu1 %v6509_v3 }
  0x60   :  { %6122 = vmatpush3.bf16.msra.mxu1 %v6691_v31 }
  0x61   :  { %6123 = vmatprep.subr.bf16.mxu1 %v6509_v3 }
  0x63   :  { %5566 = vmatmul.mubr.f32.vlgmr.msra.gmra.mrb[2].mxu1 %v1645_v48  ;;  %v1065_v48 = vsel %vm54_vm5, %v1064_v21, %v1063_v40 }
  0x64   :  { %6125 = vmatpush3.bf16.msra.mxu1 %v6561_v12  ;;  %5576 = vmatprep.mubr.msk.f32.mxu1 %vm6510_vm1, %v6511_v9 }
  0x65   :  { %6126 = vmatprep.subr.bf16.mxu1 %v6509_v3 }
  0x68   :  { %6128 = vmatpush3.bf16.msra.mxu1 %v6596_v23 }
  0x69   :  { %6129 = vmatprep.subr.bf16.mxu1 %v6509_v3 }
  0x6b   :  { %5577 = vmatmul.mubr.f32.vlgmr.msra.gmra.mrb[2].mxu1 %v1646_v47  ;;  %v1067_v47 = vsel %vm57_vm6, %v1066_v22, %v1065_v48 }
  0x6c   :  { %6131 = vmatpush3.bf16.msra.mxu1 %v6727_v43  ;;  %5587 = vmatprep.mubr.msk.f32.mxu1 %vm6510_vm1, %v6511_v9  ;;  %v1069_v49 = vsel %vm60_vm7, %v1068_v38, %v1067_v47 }
  0x6d   :  { %6132 = vmatprep.subr.bf16.mxu1 %v6509_v3 }
  0x70   :  { %6134 = vmatpush3.bf16.msra.mxu1 %v6739_v20 }
  0x71   :  { %6135 = vmatprep.subr.bf16.mxu1 %v6509_v3 }
  0x73   :  { %5588 = vmatmul.mubr.f32.vlgmr.msra.gmra.mrb[2].mxu1 %v1644_v45 }
  0x74   :  { %6137 = vmatpush3.bf16.msra.mxu1 %v6561_v12  ;;  %5598 = vmatprep.mubr.msk.f32.mxu1 %vm6510_vm1, %v6511_v9 }
  0x75   :  { %6138 = vmatprep.subr.bf16.mxu1 %v6509_v3 }
  0x78   :  { %6140 = vmatpush3.bf16.msra.mxu1 %v6596_v23 }
  0x79   :  { %6177 = vmatprep.subr.bf16.mxu1 %v6509_v3 }
  0x7b   :  { %5599 = vmatmul.mubr.f32.vlgmr.msra.gmra.mrb[2].mxu1 %v1644_v45  ;;  %v1070_v45 = vrot.slane %v6601_v24, 3  ;;  %v2146_v24 = vsub.f32 %v2074_v19, %v6911_v5 }
  0x7c   :  { %5675 = vmatprep.mubr.msk.f32.mxu1 %vm6510_vm1, %v6511_v9  ;;  %6179 = vmatpush3.bf16.msra.mxu1 %v6837_v57 }
  0x7d   :  { %6180 = vmatprep.subr.bf16.mxu1 %v6509_v3  ;;  %v1071_v50 = vsel %vm63_vm8, %v1070_v45, %v1069_v49  ;;  %v2147_v6 = vand.u32 4294901760, %v2146_v24 }
  0x7e   :  { %v1072_v51 = vsel %vm65_vm9, %v1071_v50, 0 }
  0x7f   :  { %v1143_v52 = vand.u32 4294901760, %v1072_v51  ;;  %v2148_v7 = vsub.f32 %v2146_v24, %v2147_v6 }
  0x80   :  { %6182 = vmatpush3.bf16.msra.mxu1 %v6840_v62 }
  0x81   :  { %6183 = vmatprep.subr.bf16.mxu1 %v6509_v3  ;;  %v1144_v53 = vsub.f32 %v1072_v51, %v1143_v52  ;;  %v2149_v27 = vand.u32 4294901760, %v2148_v7 }
  0x83   :  { %v1145_v54 = vand.u32 4294901760, %v1144_v53 }
  0x85   :  { %v1146_v55 = vsub.f32 %v1144_v53, %v1145_v54 }
  0x87   :  { %v1147_v56 = vand.u32 4294901760, %v1146_v55 }
  0x89   :  { %5478 = vmatmul.mubr.f32.vlgmr.msra.gmra.mrb[2].mxu0 %v1147_v56 }
  0x8a   :  { %6077 = vmatpush3.bf16.msra.mxu0 %v6663_v2  ;;  %5488 = vmatprep.mubr.msk.f32.mxu0 %vm6510_vm1, %v6511_v9 }
  0x8b   :  { %6078 = vmatprep.subr.bf16.mxu0 %v6509_v3 }
  0x8e   :  { %6080 = vmatpush3.bf16.msra.mxu0 %v6671_v25 }
  0x8f   :  { %6081 = vmatprep.subr.bf16.mxu0 %v6509_v3 }
  0x91   :  { %5489 = vmatmul.mubr.f32.vlgmr.msra.gmra.mrb[2].mxu0 %v1143_v52 }
  0x92   :  { %6083 = vmatpush3.bf16.msra.mxu0 %v6683_v28  ;;  %5499 = vmatprep.mubr.msk.f32.mxu0 %vm6510_vm1, %v6511_v9 }
  0x93   :  { %6084 = vmatprep.subr.bf16.mxu0 %v6509_v3 }
  0x96   :  { %6086 = vmatpush3.bf16.msra.mxu0 %v6691_v31 }
  0x97   :  { %6087 = vmatprep.subr.bf16.mxu0 %v6509_v3 }
  0x99   :  { %5500 = vmatmul.mubr.f32.vlgmr.msra.gmra.mrb[2].mxu0 %v1144_v53 }
  0x9a   :  { %6089 = vmatpush3.bf16.msra.mxu0 %v6561_v12  ;;  %5510 = vmatprep.mubr.msk.f32.mxu0 %vm6510_vm1, %v6511_v9 }
  0x9b   :  { %6090 = vmatprep.subr.bf16.mxu0 %v6509_v3 }
  0x9e   :  { %6092 = vmatpush3.bf16.msra.mxu0 %v6596_v23 }
  0x9f   :  { %6093 = vmatprep.subr.bf16.mxu0 %v6509_v3 }
  0xa1   :  { %5511 = vmatmul.mubr.f32.vlgmr.msra.gmra.mrb[2].mxu0 %v1145_v54 }
  0xa2   :  { %6095 = vmatpush3.bf16.msra.mxu0 %v6727_v43  ;;  %5521 = vmatprep.mubr.msk.f32.mxu0 %vm6510_vm1, %v6511_v9 }
  0xa3   :  { %6096 = vmatprep.subr.bf16.mxu0 %v6509_v3 }
  0xa6   :  { %6098 = vmatpush3.bf16.msra.mxu0 %v6739_v20 }
  0xa7   :  { %6099 = vmatprep.subr.bf16.mxu0 %v6509_v3 }
  0xa9   :  { %5522 = vmatmul.mubr.f32.vlgmr.msra.gmra.mrb[2].mxu0 %v1143_v52 }
  0xaa   :  { %6101 = vmatpush3.bf16.msra.mxu0 %v6561_v12  ;;  %5532 = vmatprep.mubr.msk.f32.mxu0 %vm6510_vm1, %v6511_v9 }
  0xab   :  { %6102 = vmatprep.subr.bf16.mxu0 %v6509_v3 }
  0xae   :  { %6104 = vmatpush3.bf16.msra.mxu0 %v6596_v23 }
  0xaf   :  { %6141 = vmatprep.subr.bf16.mxu0 %v6509_v3 }
  0xb1   :  { %5533 = vmatmul.mubr.f32.vlgmr.msra.gmra.mrb[2].mxu0 %v1143_v52 }
  0xb2   :  { %6143 = vmatpush3.bf16.msra.mxu0 %v6561_v12  ;;  %5609 = vmatprep.mubr.msk.f32.mxu0 %vm6510_vm1, %v6511_v9 }
  0xb3   :  { %6144 = vmatprep.subr.bf16.mxu0 %v6509_v3 }
  0xb6   :  { %6146 = vmatpush3.bf16.msra.mxu0 %v6596_v23 }
  0xb7   :  { %6147 = vmatprep.subr.bf16.mxu0 %v6509_v3 }
  0xb9   :  { %5610 = vmatmul.mubr.f32.vlgmr.msra.gmra.mrb[4].mxu0 %v2149_v27 }
  0xba   :  { %6149 = vmatpush3.bf16.msra.mxu0 %v6663_v2  ;;  %5620 = vmatprep.mubr.msk.f32.mxu0 %vm6510_vm1, %v6511_v9 }
  0xbb   :  { %6150 = vmatprep.subr.bf16.mxu0 %v6509_v3 }
  0xbe   :  { %6152 = vmatpush3.bf16.msra.mxu0 %v6671_v25 }
  0xbf   :  { %6153 = vmatprep.subr.bf16.mxu0 %v6509_v3 }
  0xc1   :  { %5621 = vmatmul.mubr.f32.vlgmr.msra.gmra.mrb[4].mxu0 %v6911_v5 }
  0xc2   :  { %6155 = vmatpush3.bf16.msra.mxu0 %v6683_v28  ;;  %5631 = vmatprep.mubr.msk.f32.mxu0 %vm6510_vm1, %v6511_v9 }
  0xc3   :  { %6156 = vmatprep.subr.bf16.mxu0 %v6509_v3 }
  0xc6   :  { %6158 = vmatpush3.bf16.msra.mxu0 %v6691_v31 }
  0xc7   :  { %6159 = vmatprep.subr.bf16.mxu0 %v6509_v3 }
  0xc9   :  { %5632 = vmatmul.mubr.f32.vlgmr.msra.gmra.mrb[4].mxu0 %v2146_v24 }
  0xca   :  { %6161 = vmatpush3.bf16.msra.mxu0 %v6561_v12  ;;  %5642 = vmatprep.mubr.msk.f32.mxu0 %vm6510_vm1, %v6511_v9 }
  0xcb   :  { %6162 = vmatprep.subr.bf16.mxu0 %v6509_v3 }
  0xce   :  { %6164 = vmatpush3.bf16.msra.mxu0 %v6596_v23 }
  0xcf   :  { %6165 = vmatprep.subr.bf16.mxu0 %v6509_v3 }
  0xd1   :  { %5643 = vmatmul.mubr.f32.vlgmr.msra.gmra.mrb[4].mxu0 %v2147_v6 }
  0xd2   :  { %6167 = vmatpush3.bf16.msra.mxu0 %v6727_v43  ;;  %5653 = vmatprep.mubr.msk.f32.mxu0 %vm6510_vm1, %v6511_v9 }
  0xd3   :  { %6168 = vmatprep.subr.bf16.mxu0 %v6509_v3 }
  0xd6   :  { %6170 = vmatpush3.bf16.msra.mxu0 %v6739_v20 }
  0xd7   :  { %6171 = vmatprep.subr.bf16.mxu0 %v6509_v3 }
  0xd9   :  { %5654 = vmatmul.mubr.f32.vlgmr.msra.gmra.mrb[4].mxu0 %v6911_v5 }
  0xda   :  { %6173 = vmatpush3.bf16.msra.mxu0 %v6561_v12  ;;  %5664 = vmatprep.mubr.msk.f32.mxu0 %vm6510_vm1, %v6511_v9 }
  0xdb   :  { %6174 = vmatprep.subr.bf16.mxu0 %v6509_v3 }
  0xde   :  { %6176 = vmatpush3.bf16.msra.mxu0 %v6596_v23 }
  0xdf   :  { %6213 = vmatprep.subr.bf16.mxu0 %v6509_v3 }
  0xe1   :  { %5665 = vmatmul.mubr.f32.vlgmr.msra.gmra.mrb[4].mxu0 %v6911_v5 }
  0xe2   :  { %6215 = vmatpush3.bf16.msra.mxu0 %v6837_v57  ;;  %5741 = vmatprep.mubr.msk.f32.mxu0 %vm6510_vm1, %v6511_v9 }
  0xe3   :  { %6216 = vmatprep.subr.bf16.mxu0 %v6509_v3 }
  0xe6   :  { %6218 = vmatpush3.bf16.msra.mxu0 %v6840_v62 }
  0xe7   :  { %6219 = vmatprep.subr.bf16.mxu0 %v6509_v3 }
 0x114   :  { %v553_v13 = vpop.f32.mrb[0].mxu0 }
 0x115   :  { %v6357_v16 = vadd.f32 %v6925_v8, %v553_v13  ;;  %v5402_v26 = vpop.f32.mrb[1].mxu0 }
 0x117   :  { %6475 = vtanh.f32 %v6357_v16 }
 0x121   :  { %v6476_v30 = vpop.eup %6475 }
 0x122   :  { %v2564_v32 = vsel %vm2562_vm10, %v6476_v30, 0 }
 0x123   :  { %v2635_v2 = vand.u32 4294901760, %v2564_v32 }
 0x125   :  { %v2636_v42 = vsub.f32 %v2564_v32, %v2635_v2 }
 0x127   :  { %v2637_v25 = vand.u32 4294901760, %v2636_v42 }
 0x129   :  { %v2638_v44 = vsub.f32 %v2636_v42, %v2637_v25 }
 0x12b   :  { %v2639_v28 = vand.u32 4294901760, %v2638_v44 }
 0x12d   :  { %5676 = vmatmul.mubr.f32.vlgmr.msra.gmra.mrb[0].mxu1 %v2639_v28 }
 0x12e   :  { %6185 = vmatpush3.bf16.msra.mxu1 %v6845_v29  ;;  %5686 = vmatprep.mubr.msk.f32.mxu1 %vm6510_vm1, %v6511_v9 }
 0x12f   :  { %6186 = vmatprep.subr.bf16.mxu1 %v6509_v3 }
 0x132   :  { %6188 = vmatpush3.bf16.msra.mxu1 %v6847_v33 }
 0x133   :  { %6189 = vmatprep.subr.bf16.mxu1 %v6509_v3 }
 0x135   :  { %5687 = vmatmul.mubr.f32.vlgmr.msra.gmra.mrb[0].mxu1 %v2635_v2 }
 0x136   :  { %6191 = vmatpush3.bf16.msra.mxu1 %v6849_v34  ;;  %5697 = vmatprep.mubr.msk.f32.mxu1 %vm6510_vm1, %v6511_v9 }
 0x137   :  { %6192 = vmatprep.subr.bf16.mxu1 %v6509_v3 }
 0x13a   :  { %6194 = vmatpush3.bf16.msra.mxu1 %v6851_v37 }
 0x13b   :  { %6195 = vmatprep.subr.bf16.mxu1 %v6509_v3 }
 0x13d   :  { %5698 = vmatmul.mubr.f32.vlgmr.msra.gmra.mrb[0].mxu1 %v2636_v42 }
 0x13e   :  { %6197 = vmatpush3.bf16.msra.mxu1 %v6837_v57  ;;  %5708 = vmatprep.mubr.msk.f32.mxu1 %vm6510_vm1, %v6511_v9 }
 0x13f   :  { %6198 = vmatprep.subr.bf16.mxu1 %v6509_v3 }
 0x142   :  { %6200 = vmatpush3.bf16.msra.mxu1 %v6840_v62 }
 0x143   :  { %6201 = vmatprep.subr.bf16.mxu1 %v6509_v3 }
 0x145   :  { %5709 = vmatmul.mubr.f32.vlgmr.msra.gmra.mrb[0].mxu1 %v2637_v25 }
 0x146   :  { %6203 = vmatpush3.bf16.msra.mxu1 %v6853_v39  ;;  %5719 = vmatprep.mubr.msk.f32.mxu1 %vm6510_vm1, %v6511_v9 }
 0x147   :  { %6204 = vmatprep.subr.bf16.mxu1 %v6509_v3 }
 0x14a   :  { %6206 = vmatpush3.bf16.msra.mxu1 %v6855_v41 }
 0x14b   :  { %6207 = vmatprep.subr.bf16.mxu1 %v6509_v3 }
 0x14d   :  { %5720 = vmatmul.mubr.f32.vlgmr.msra.gmra.mrb[0].mxu1 %v2635_v2 }
 0x14e   :  { %6209 = vmatpush3.bf16.msra.mxu1 %v6837_v57  ;;  %5730 = vmatprep.mubr.msk.f32.mxu1 %vm6510_vm1, %v6511_v9 }
 0x14f   :  { %6210 = vmatprep.subr.bf16.mxu1 %v6509_v3 }
 0x152   :  { %6212 = vmatpush3.bf16.msra.mxu1 %v6840_v62 }
 0x153   :  { %6249 = vmatprep.subr.bf16.mxu1 %v6509_v3 }
 0x155   :  { %5731 = vmatmul.mubr.f32.vlgmr.msra.gmra.mrb[0].mxu1 %v2635_v2 }
 0x156   :  { %6251 = vmatpush3.bf16.msra.mxu1 %v6837_v57  ;;  %5807 = vmatprep.mubr.msk.f32.mxu1 %vm6510_vm1, %v6511_v9 }
 0x157   :  { %6252 = vmatprep.subr.bf16.mxu1 %v6509_v3 }
 0x15a   :  { %6254 = vmatpush3.bf16.msra.mxu1 %v6840_v62 }
 0x15b   :  { %6255 = vmatprep.subr.bf16.mxu1 %v6509_v3 }
 0x228   :  { %v3047_v12 = vpop.f32.mrb[0].mxu1 }
 0x229   :  { %v6358_v23 = vadd.f32 %v6925_v8, %v3047_v12  ;;  %v5732_v31 = vpop.f32.mrb[1].mxu1 }
 0x22b   :  { %6477 = vtanh.f32 %v6358_v23 }
 0x235   :  { %v6478_v43 = vpop.eup %6477 }
 0x236   :  { %v3054_v20 = vsel %vm2562_vm10, %v6478_v43, 0 }
 0x237   :  { %v3125_v46 = vand.u32 4294901760, %v3054_v20 }
 0x239   :  { %v3126_v21 = vsub.f32 %v3054_v20, %v3125_v46 }
 0x23b   :  { %v3127_v35 = vand.u32 4294901760, %v3126_v21 }
 0x23d   :  { %v3128_v22 = vsub.f32 %v3126_v21, %v3127_v35 }
 0x23f   :  { %v3129_v36 = vand.u32 4294901760, %v3128_v22 }
 0x241   :  { %5742 = vmatmul.mubr.f32.vlgmr.msra.gmra.mrb[2].mxu0 %v3129_v36 }
 0x242   :  { %6221 = vmatpush3.bf16.msra.mxu0 %v6845_v29  ;;  %5752 = vmatprep.mubr.msk.f32.mxu0 %vm6510_vm1, %v6511_v9 }
 0x243   :  { %6222 = vmatprep.subr.bf16.mxu0 %v6509_v3 }
 0x246   :  { %6224 = vmatpush3.bf16.msra.mxu0 %v6847_v33 }
 0x247   :  { %6225 = vmatprep.subr.bf16.mxu0 %v6509_v3 }
 0x249   :  { %5753 = vmatmul.mubr.f32.vlgmr.msra.gmra.mrb[2].mxu0 %v3125_v46 }
 0x24a   :  { %6227 = vmatpush3.bf16.msra.mxu0 %v6849_v34  ;;  %5763 = vmatprep.mubr.msk.f32.mxu0 %vm6510_vm1, %v6511_v9 }
 0x24b   :  { %6228 = vmatprep.subr.bf16.mxu0 %v6509_v3 }
 0x24e   :  { %6230 = vmatpush3.bf16.msra.mxu0 %v6851_v37 }
 0x24f   :  { %6231 = vmatprep.subr.bf16.mxu0 %v6509_v3 }
 0x251   :  { %5764 = vmatmul.mubr.f32.vlgmr.msra.gmra.mrb[2].mxu0 %v3126_v21 }
 0x252   :  { %6233 = vmatpush3.bf16.msra.mxu0 %v6837_v57  ;;  %5774 = vmatprep.mubr.msk.f32.mxu0 %vm6510_vm1, %v6511_v9 }
 0x253   :  { %6234 = vmatprep.subr.bf16.mxu0 %v6509_v3 }
 0x256   :  { %6236 = vmatpush3.bf16.msra.mxu0 %v6840_v62 }
 0x257   :  { %6237 = vmatprep.subr.bf16.mxu0 %v6509_v3 }
 0x259   :  { %5775 = vmatmul.mubr.f32.vlgmr.msra.gmra.mrb[2].mxu0 %v3127_v35 }
 0x25a   :  { %6239 = vmatpush3.bf16.msra.mxu0 %v6853_v39  ;;  %5785 = vmatprep.mubr.msk.f32.mxu0 %vm6510_vm1, %v6511_v9 }
 0x25b   :  { %6240 = vmatprep.subr.bf16.mxu0 %v6509_v3 }
 0x25e   :  { %6242 = vmatpush3.bf16.msra.mxu0 %v6855_v41 }
 0x25f   :  { %6243 = vmatprep.subr.bf16.mxu0 %v6509_v3 }
 0x261   :  { %5786 = vmatmul.mubr.f32.vlgmr.msra.gmra.mrb[2].mxu0 %v3125_v46 }
 0x262   :  { %6245 = vmatpush3.bf16.msra.mxu0 %v6837_v57  ;;  %5796 = vmatprep.mubr.msk.f32.mxu0 %vm6510_vm1, %v6511_v9 }
 0x263   :  { %6246 = vmatprep.subr.bf16.mxu0 %v6509_v3 }
 0x266   :  { %6248 = vmatpush3.bf16.msra.mxu0 %v6840_v62 }
 0x267   :  { %6285 = vmatprep.subr.bf16.mxu0 %v6509_v3 }
 0x269   :  { %5797 = vmatmul.mubr.f32.vlgmr.msra.gmra.mrb[2].mxu0 %v3125_v46 }
 0x26a   :  { %6287 = vmatpush3.bf16.msra.mxu0 %v6837_v57  ;;  %5873 = vmatprep.mubr.msk.f32.mxu0 %vm6510_vm1, %v6511_v9 }
 0x26b   :  { %6288 = vmatprep.subr.bf16.mxu0 %v6509_v3 }
 0x26e   :  { %6290 = vmatpush3.bf16.msra.mxu0 %v6840_v62 }
 0x26f   :  { %6291 = vmatprep.subr.bf16.mxu0 %v6509_v3 }
 0x33c   :  { %v3537_v38 = vpop.f32.mrb[2].mxu0 }
 0x33d   :  { %v6359_v40 = vadd.f32 %v6925_v8, %v3537_v38  ;;  %v5798_v45 = vpop.f32.mrb[3].mxu0 }
 0x33f   :  { %6479 = vtanh.f32 %v6359_v40 }
 0x349   :  { %v6480_v48 = vpop.eup %6479 }
 0x34a   :  { %v3544_v47 = vsel %vm2562_vm10, %v6480_v48, 0 }
 0x34b   :  { %v3615_v49 = vand.u32 4294901760, %v3544_v47 }
 0x34d   :  { %v3616_v50 = vsub.f32 %v3544_v47, %v3615_v49 }
 0x34f   :  { %v3617_v51 = vand.u32 4294901760, %v3616_v50 }
 0x351   :  { %v3618_v52 = vsub.f32 %v3616_v50, %v3617_v51 }
 0x353   :  { %v3619_v53 = vand.u32 4294901760, %v3618_v52 }
 0x355   :  { %5808 = vmatmul.mubr.f32.vlgmr.msra.gmra.mrb[2].mxu1 %v3619_v53 }
 0x356   :  { %6257 = vmatpush3.bf16.msra.mxu1 %v6845_v29  ;;  %5818 = vmatprep.mubr.msk.f32.mxu1 %vm6510_vm1, %v6511_v9 }
 0x357   :  { %6258 = vmatprep.subr.bf16.mxu1 %v6509_v3 }
 0x35a   :  { %6260 = vmatpush3.bf16.msra.mxu1 %v6847_v33 }
 0x35b   :  { %6261 = vmatprep.subr.bf16.mxu1 %v6509_v3 }
 0x35d   :  { %5819 = vmatmul.mubr.f32.vlgmr.msra.gmra.mrb[2].mxu1 %v3615_v49 }
 0x35e   :  { %6263 = vmatpush3.bf16.msra.mxu1 %v6849_v34  ;;  %5829 = vmatprep.mubr.msk.f32.mxu1 %vm6510_vm1, %v6511_v9 }
 0x35f   :  { %6264 = vmatprep.subr.bf16.mxu1 %v6509_v3 }
 0x362   :  { %6266 = vmatpush3.bf16.msra.mxu1 %v6851_v37 }
 0x363   :  { %6267 = vmatprep.subr.bf16.mxu1 %v6509_v3 }
 0x365   :  { %5830 = vmatmul.mubr.f32.vlgmr.msra.gmra.mrb[2].mxu1 %v3616_v50 }
 0x366   :  { %6269 = vmatpush3.bf16.msra.mxu1 %v6837_v57  ;;  %5840 = vmatprep.mubr.msk.f32.mxu1 %vm6510_vm1, %v6511_v9 }
 0x367   :  { %6270 = vmatprep.subr.bf16.mxu1 %v6509_v3 }
 0x36a   :  { %6272 = vmatpush3.bf16.msra.mxu1 %v6840_v62 }
 0x36b   :  { %6273 = vmatprep.subr.bf16.mxu1 %v6509_v3 }
 0x36d   :  { %5841 = vmatmul.mubr.f32.vlgmr.msra.gmra.mrb[2].mxu1 %v3617_v51 }
 0x36e   :  { %6275 = vmatpush3.bf16.msra.mxu1 %v6853_v39  ;;  %5851 = vmatprep.mubr.msk.f32.mxu1 %vm6510_vm1, %v6511_v9 }
 0x36f   :  { %6276 = vmatprep.subr.bf16.mxu1 %v6509_v3 }
 0x372   :  { %6278 = vmatpush3.bf16.msra.mxu1 %v6855_v41 }
 0x373   :  { %6279 = vmatprep.subr.bf16.mxu1 %v6509_v3 }
 0x375   :  { %5852 = vmatmul.mubr.f32.vlgmr.msra.gmra.mrb[2].mxu1 %v3615_v49 }
 0x376   :  { %6281 = vmatpush3.bf16.msra.mxu1 %v6837_v57  ;;  %5862 = vmatprep.mubr.msk.f32.mxu1 %vm6510_vm1, %v6511_v9 }
 0x377   :  { %6282 = vmatprep.subr.bf16.mxu1 %v6509_v3 }
 0x37a   :  { %6284 = vmatpush3.bf16.msra.mxu1 %v6840_v62 }
 0x37b   :  { %6321 = vmatprep.subr.bf16.mxu1 %v6509_v3 }
 0x37d   :  { %5863 = vmatmul.mubr.f32.vlgmr.msra.gmra.mrb[2].mxu1 %v3615_v49 }
 0x37e   :  { %5939 = vmatprep.mubr.msk.f32.mxu1 %vm6510_vm1, %v6511_v9 }
 0x450   :  { %v4027_v54 = vpop.f32.mrb[2].mxu1 }
 0x451   :  { %v6360_v55 = vadd.f32 %v6925_v8, %v4027_v54  ;;  %v5864_v56 = vpop.f32.mrb[3].mxu1 }
 0x453   :  { %6481 = vtanh.f32 %v6360_v55 }
 0x45d   :  { %v6482_v58 = vpop.eup %6481 }
 0x45e   :  { %v4034_v59 = vsel %vm2562_vm10, %v6482_v58, 0 }
 0x45f   :  { %v4105_v60 = vand.u32 4294901760, %v4034_v59 }
 0x461   :  { %v4106_v61 = vsub.f32 %v4034_v59, %v4105_v60 }
 0x463   :  { %v4107_v63 = vand.u32 4294901760, %v4106_v61 }
 0x465   :  { %v4108_v10 = vsub.f32 %v4106_v61, %v4107_v63 }
 0x467   :  { %v4109_v11 = vand.u32 4294901760, %v4108_v10 }
 0x469   :  { %5874 = vmatmul.mubr.f32.vlgmr.msra.gmra.mrb[4].mxu0 %v4109_v11 }
 0x46a   :  { %6293 = vmatpush3.bf16.msra.mxu0 %v6845_v29  ;;  %5884 = vmatprep.mubr.msk.f32.mxu0 %vm6510_vm1, %v6511_v9  ;;  %v4523_v29 = vld [vmem:[%s7170_s2] sm:$0xff] }
 0x46b   :  { %6294 = vmatprep.subr.bf16.mxu0 %v6509_v3 }
 0x46e   :  { %6296 = vmatpush3.bf16.msra.mxu0 %v6847_v33  ;;  %v4524_v33 = vld [vmem:[%s7170_s2 + $0x8] sm:$0xff] }
 0x46f   :  { %6297 = vmatprep.subr.bf16.mxu0 %v6509_v3 }
 0x471   :  { %5885 = vmatmul.mubr.f32.vlgmr.msra.gmra.mrb[4].mxu0 %v4105_v60 }
 0x472   :  { %6299 = vmatpush3.bf16.msra.mxu0 %v6849_v34  ;;  %5895 = vmatprep.mubr.msk.f32.mxu0 %vm6510_vm1, %v6511_v9  ;;  %v4536_v34 = vand.u32 4294901760, %v4523_v29 }
 0x473   :  { %6300 = vmatprep.subr.bf16.mxu0 %v6509_v3 }
 0x476   :  { %6302 = vmatpush3.bf16.msra.mxu0 %v6851_v37  ;;  %v4539_v37 = vand.u32 4294901760, %v4524_v33 }
 0x477   :  { %6303 = vmatprep.subr.bf16.mxu0 %v6509_v3 }
 0x478   :  { %v4623_v14 = vsub.f32 %v4524_v33, %v4539_v37 }
 0x479   :  { %5896 = vmatmul.mubr.f32.vlgmr.msra.gmra.mrb[4].mxu0 %v4106_v61 }
 0x47a   :  { %6305 = vmatpush3.bf16.msra.mxu0 %v6837_v57  ;;  %5906 = vmatprep.mubr.msk.f32.mxu0 %vm6510_vm1, %v6511_v9  ;;  %v4624_v4 = vand.u32 4294901760, %v4623_v14 }
 0x47b   :  { %6306 = vmatprep.subr.bf16.mxu0 %v6509_v3 }
 0x47c   :  { %v4625_v24 = vsub.f32 %v4623_v14, %v4624_v4 }
 0x47e   :  { %6308 = vmatpush3.bf16.msra.mxu0 %v6840_v62  ;;  %v4626_v7 = vand.u32 4294901760, %v4625_v24 }
 0x47f   :  { %6309 = vmatprep.subr.bf16.mxu0 %v6509_v3 }
 0x481   :  { %5907 = vmatmul.mubr.f32.vlgmr.msra.gmra.mrb[4].mxu0 %v4107_v63 }
 0x482   :  { %6311 = vmatpush3.bf16.msra.mxu0 %v6853_v39  ;;  %5917 = vmatprep.mubr.msk.f32.mxu0 %vm6510_vm1, %v6511_v9  ;;  %v4526_v39 = vld [vmem:[%s7170_s2 + $0x18] sm:$0xff] }
 0x483   :  { %6312 = vmatprep.subr.bf16.mxu0 %v6509_v3  ;;  %v4545_v15 = vand.u32 4294901760, %v4526_v39 }
 0x485   :  { %v4637_v19 = vsub.f32 %v4526_v39, %v4545_v15 }
 0x486   :  { %6314 = vmatpush3.bf16.msra.mxu0 %v6855_v41  ;;  %v4616_v41 = vsub.f32 %v4523_v29, %v4536_v34 }
 0x487   :  { %6315 = vmatprep.subr.bf16.mxu0 %v6509_v3  ;;  %v4638_v16 = vand.u32 4294901760, %v4637_v19 }
 0x488   :  { %v4617_v18 = vand.u32 4294901760, %v4616_v41  ;;  %v6334_v25 = vpack.c.bf16 %v4623_v14, %v4616_v41 }
 0x489   :  { %5918 = vmatmul.mubr.f32.vlgmr.msra.gmra.mrb[4].mxu0 %v4105_v60  ;;  %v4639_v30 = vsub.f32 %v4637_v19, %v4638_v16 }
 0x48a   :  { %6317 = vmatpush3.bf16.msra.mxu0 %v6837_v57  ;;  %5928 = vmatprep.mubr.msk.f32.mxu0 %vm6510_vm1, %v6511_v9  ;;  %v4525_v57 = vld [vmem:[%s7170_s2 + $0x10] sm:$0xff]  ;;  %v4618_v5 = vsub.f32 %v4616_v41, %v4617_v18  ;;  %v6346_v28 = vpack.c.bf16 %v4624_v4, %v4617_v18 }
 0x48b   :  { %6318 = vmatprep.subr.bf16.mxu0 %v6509_v3  ;;  %v4542_v0 = vand.u32 4294901760, %v4525_v57  ;;  %v4640_v2 = vand.u32 4294901760, %v4639_v30 }
 0x48c   :  { %v4619_v6 = vand.u32 4294901760, %v4618_v5 }
 0x48d   :  { %v4630_v1 = vsub.f32 %v4525_v57, %v4542_v0  ;;  %v6325_v17 = vpack.c.bf16 %v4545_v15, %v4542_v0 }
 0x48e   :  { %6320 = vmatpush3.bf16.msra.mxu0 %v6840_v62  ;;  %v7125_v62 = vpack.c.bf16 %v4539_v37, %v4536_v34  ;;  %v6328_v26 = vpack.c.bf16 %v4626_v7, %v4619_v6 }
 0x48f   :  { %v4631_v13 = vand.u32 4294901760, %v4630_v1  ;;  %v6337_v44 = vpack.c.bf16 %v4637_v19, %v4630_v1 }
 0x490   :  { %6323 = vmatpush3.bf16.msra.mxu1 %v7125_v62 }
 0x491   :  { %5929 = vmatmul.mubr.f32.vlgmr.msra.gmra.mrb[4].mxu0 %v4105_v60  ;;  %6324 = vmatprep.subr.bf16.mxu1 %v6509_v3  ;;  %v4632_v27 = vsub.f32 %v4630_v1, %v4631_v13  ;;  %v6349_v12 = vpack.c.bf16 %v4638_v16, %v4631_v13 }
 0x493   :  { %v4633_v32 = vand.u32 4294901760, %v4632_v27 }
 0x494   :  { %6326 = vmatpush3.bf16.msra.mxu1 %v6325_v17 }
 0x495   :  { %6327 = vmatprep.subr.bf16.mxu1 %v6509_v3  ;;  %v6331_v42 = vpack.c.bf16 %v4640_v2, %v4633_v32 }
 0x564   :  { %v4517_v23 = vpop.f32.mrb[4].mxu0 }
 0x565   :  { %v6361_v31 = vadd.f32 %v6925_v8, %v4517_v23  ;;  %v5930_v43 = vpop.f32.mrb[5].mxu0  ;;  %v5036_v8 = vld [vmem:[%s7170_s2 + $0x20] ss:$0 sm:$0xff] }
 0x567   :  { %6483 = vtanh.f32 %v6361_v31 }
 0x571   :  { %v6484_v20 = vpop.eup %6483 }
 0x572   :  { %v4533_v46 = vsel %vm2562_vm10, %v6484_v20, 0 }
 0x573   :  { %v4604_v21 = vand.u32 4294901760, %v4533_v46 }
 0x575   :  { %v4605_v35 = vsub.f32 %v4533_v46, %v4604_v21 }
 0x577   :  { %v4606_v22 = vand.u32 4294901760, %v4605_v35 }
 0x579   :  { %v4607_v36 = vsub.f32 %v4605_v35, %v4606_v22 }
 0x57b   :  { %v4608_v38 = vand.u32 4294901760, %v4607_v36 }
 0x57d   :  { %5940 = vmatmul.mubr.f32.vlgmr.msra.gmra.mrb[4].mxu1 %v4608_v38 }
 0x57e   :  { %6329 = vmatpush3.bf16.msra.mxu1 %v6328_v26  ;;  %5950 = vmatprep.mubr.msk.f32.mxu1 %vm6510_vm1, %v6511_v9 }
 0x57f   :  { %6330 = vmatprep.subr.bf16.mxu1 %v6509_v3 }
 0x582   :  { %6332 = vmatpush3.bf16.msra.mxu1 %v6331_v42 }
 0x583   :  { %6333 = vmatprep.subr.bf16.mxu1 %v6509_v3 }
 0x585   :  { %5951 = vmatmul.mubr.f32.vlgmr.msra.gmra.mrb[4].mxu1 %v4604_v21 }
 0x586   :  { %6335 = vmatpush3.bf16.msra.mxu1 %v6334_v25  ;;  %5961 = vmatprep.mubr.msk.f32.mxu1 %vm6510_vm1, %v6511_v9 }
 0x587   :  { %6336 = vmatprep.subr.bf16.mxu1 %v6509_v3 }
 0x58a   :  { %6338 = vmatpush3.bf16.msra.mxu1 %v6337_v44 }
 0x58b   :  { %6339 = vmatprep.subr.bf16.mxu1 %v6509_v3 }
 0x58d   :  { %5962 = vmatmul.mubr.f32.vlgmr.msra.gmra.mrb[4].mxu1 %v4605_v35 }
 0x58e   :  { %6341 = vmatpush3.bf16.msra.mxu1 %v7125_v62  ;;  %5972 = vmatprep.mubr.msk.f32.mxu1 %vm6510_vm1, %v6511_v9 }
 0x58f   :  { %6342 = vmatprep.subr.bf16.mxu1 %v6509_v3 }
 0x592   :  { %6344 = vmatpush3.bf16.msra.mxu1 %v6325_v17 }
 0x593   :  { %6345 = vmatprep.subr.bf16.mxu1 %v6509_v3 }
 0x595   :  { %5973 = vmatmul.mubr.f32.vlgmr.msra.gmra.mrb[4].mxu1 %v4606_v22 }
 0x596   :  { %6347 = vmatpush3.bf16.msra.mxu1 %v6346_v28  ;;  %5983 = vmatprep.mubr.msk.f32.mxu1 %vm6510_vm1, %v6511_v9 }
 0x597   :  { %6348 = vmatprep.subr.bf16.mxu1 %v6509_v3 }
 0x59a   :  { %6350 = vmatpush3.bf16.msra.mxu1 %v6349_v12 }
 0x59b   :  { %6351 = vmatprep.subr.bf16.mxu1 %v6509_v3 }
 0x59d   :  { %5984 = vmatmul.mubr.f32.vlgmr.msra.gmra.mrb[4].mxu1 %v4604_v21 }
 0x59e   :  { %6353 = vmatpush3.bf16.msra.mxu1 %v7125_v62  ;;  %5994 = vmatprep.mubr.msk.f32.mxu1 %vm6510_vm1, %v6511_v9 }
 0x59f   :  { %6354 = vmatprep.subr.bf16.mxu1 %v6509_v3 }
 0x5a2   :  { %6356 = vmatpush3.bf16.msra.mxu1 %v6325_v17 }
 0x5a5   :  { %5995 = vmatmul.mubr.f32.vlgmr.msra.gmra.mrb[4].mxu1 %v4604_v21 }
 0x678   :  { %v5016_v40 = vpop.f32.mrb[4].mxu1 }
 0x679   :  { %v6362_v45 = vadd.f32 %v5036_v8, %v5016_v40  ;;  %v5996_v48 = vpop.f32.mrb[5].mxu1 }
 0x67b   :  { %5020 = vst [vmem:[#allocation2] sm:$0xff] %v6362_v45 }
 0x67c   :  { %6496 = shalt.err (!%p6493_p4)
}
 0x67d   :  { %s6497_s5 = scalar_lea.hbm %s7171_s3, 128 }
 0x67e   :  { %p6498_p5 = scmp.ne.s32.totalorder %s7171_s3, %s6497_s5  ;;  %p6501_p6 = scmp.lt.u32.totalorder %s6497_s5, %s7171_s3 }
 0x680   :  { %p6503_p7 = pnand %p6501_p6, %p6498_p5 }
 0x682   :  { %6506 = shalt.err (!%p6503_p7)
}
 0x683   :  { %5030 = dma.vmem_to_hbm [thread:$0]  %s5028_s28, 128, %s7171_s3, [#allocation3]  }
 0x684   :  { %6507 = dma.done.wait [#allocation3], 128  }
 0x685   :  { %6508 = vsyncadd [#allocation3], 4294967168 }
 0x686   :  { %5034 = vsyncpa [#allocation3], 1 }

</bundles_post_ra>
